<compile_context>
chip_gen: v7x
topology: tpu7x:2x2x1
jax: 0.10.0
libtpu: 0.0.40
codegen_flags: <defaults>
</compile_context>

<pallas_src>
import functools

import jax
import jax.numpy as jnp
from jax.experimental import pallas as pl
from jax.experimental.pallas import tpu as pltpu

MACRO_ACTIONS = ['move', 'shoot', 'intercept']
PARAM_DIMS = {'move': 2, 'shoot': 1, 'intercept': 2}
N_MACRO = len(MACRO_ACTIONS)                      # 3
N_HEAD = N_MACRO + sum(PARAM_DIMS.values())       # 3 + 5 = 8 fused head outputs
BIAS_ROWS = 8                                     # bias block padded to one sublane tile


def _macro_policy_kernel(x_ref, w_ref, out_ref, *, input_dim, hidden, emit_features):
    """Whole forward pass on one (rows, input_dim) tile, fully VMEM-resident.

    w_ref: (input_dim + 2*hidden + 8, hidden) packed slab
           rows = [ W1 | W2 | W_heads (zero-padded) | biases (8 rows: b1; b2; b_heads; 0...) ]
    out_ref: (rows, 2*hidden) if emit_features else (rows, hidden)
             columns [0:hidden] = shared features, [hidden:2*hidden] = fused head
             (or just the fused head when features are skipped).
    """
    x = x_ref[...]

    # Static row offsets into the packed slab (zero-cost ref views; input_dim is a
    # multiple of 8 and hidden a multiple of 128, so every slice is tile-aligned).
    r1 = input_dim
    r2 = input_dim + hidden
    r3 = input_dim + 2 * hidden          # bias block start (sublane aligned)

    # Single aligned (8, hidden) load of the bias block; rows 0..2 are real.
    b = w_ref[r3:r3 + BIAS_ROWS, :]

    # shared trunk: Linear -> ReLU -> Linear -> ReLU  (f32 everywhere)
    h = jnp.dot(x, w_ref[0:r1, :], preferred_element_type=jnp.float32) + b[0:1, :]
    h = jnp.maximum(h, 0.0)
    h = jnp.dot(h, w_ref[r1:r2, :], preferred_element_type=jnp.float32) + b[1:2, :]
    h = jnp.maximum(h, 0.0)

    # fused heads: one lane-dense (rows, hidden) matmul.
    # Columns [0:N_HEAD] are real; the rest are zero padding (sliced off outside).
    head = jnp.dot(h, w_ref[r2:r3, :], preferred_element_type=jnp.float32) + b[2:3, :]

    if emit_features:
        out_ref[:, 0:hidden] = h                    # full-tile, lane-aligned store
        out_ref[:, hidden:2 * hidden] = head        # full-tile, lane-aligned store
    else:
        out_ref[...] = head


def _unpack_head(head):
    """Slice the 8 real fused-head columns back into the torch return structure."""
    macro_logits = head[:, 0:N_MACRO]
    param_outputs = {}
    off = N_MACRO
    for name in MACRO_ACTIONS:
        d = PARAM_DIMS[name]
        param_outputs[name] = head[:, off:off + d]
        off += d
    return macro_logits, param_outputs


def macro_policy_forward(state, slab, *, return_features=True):
    """Single-call path.  state: (B, input_dim) f32.  slab: packed params."""
    B, input_dim = state.shape
    hidden = slab.shape[1]
    out_cols = 2 * hidden if return_features else hidden

    vmem = pl.BlockSpec(memory_space=pltpu.MemorySpace.VMEM)
    kernel = functools.partial(_macro_policy_kernel, input_dim=input_dim,
                               hidden=hidden, emit_features=return_features)

    out = pl.pallas_call(
        kernel,
        out_shape=jax.ShapeDtypeStruct((B, out_cols), jnp.float32),
        in_specs=[vmem, vmem],
        out_specs=vmem,
    )(state, slab)

    if return_features:
        feats, head = out[:, :hidden], out[:, hidden:]
    else:
        feats, head = None, out
    macro_logits, param_outputs = _unpack_head(head)
    return feats, macro_logits, param_outputs


def macro_policy_forward_steps(states, slab, *, return_features=True):
    """Rollout / multi-step path.  states: (T, B, input_dim).

    One pallas_call for all T steps: the weight slab is fetched once (constant
    index_map -> weight-stationary, VMEM-resident) while per-step state and
    output tiles stream through the BlockSpec auto-pipeline.  The batch-tile
    grid axis is "parallel" so it shards across both TensorCores on v7x.
    """
    T, B, input_dim = states.shape
    hidden = slab.shape[1]
    slab_rows = slab.shape[0]
    R = T * B
    assert B % 8 == 0, "pad B to a multiple of 8 for full-tile stores"
    flat = states.reshape(R, input_dim)
    out_cols = 2 * hidden if return_features else hidden

    kernel = functools.partial(_macro_policy_kernel, input_dim=input_dim,
                               hidden=hidden, emit_features=return_features)

    out = pl.pallas_call(
        kernel,
        out_shape=jax.ShapeDtypeStruct((R, out_cols), jnp.float32),
        grid=(T,),
        in_specs=[
            pl.BlockSpec((B, input_dim), lambda t: (t, 0)),       # streaming state tile
            pl.BlockSpec((slab_rows, hidden), lambda t: (0, 0)),  # weight-stationary slab
        ],
        out_specs=pl.BlockSpec((B, out_cols), lambda t: (t, 0)),
        compiler_params=pltpu.CompilerParams(dimension_semantics=("parallel",)),
    )(flat, slab)

    if return_features:
        feats, head = out[:, :hidden], out[:, hidden:]
        feats = feats.reshape(T, B, hidden)
    else:
        feats, head = None, out
    macro_logits, param_outputs = _unpack_head(head)
    macro_logits = macro_logits.reshape(T, B, N_MACRO)
    param_outputs = {k: v.reshape(T, B, PARAM_DIMS[k]) for k, v in param_outputs.items()}
    return feats, macro_logits, param_outputs


def init_params(key, input_dim, hidden_dim=128):
    """Deterministic synthetic init (PyTorch-Linear-like uniform fan-in scaling).
    Weights stored already transposed to (in, out)."""
    ks = jax.random.split(key, 12)

    def lin(kw, kb, fan_in, fan_out):
        bound = 1.0 / jnp.sqrt(jnp.float32(fan_in))
        w = jax.random.uniform(kw, (fan_in, fan_out), jnp.float32, -bound, bound)
        b = jax.random.uniform(kb, (1, fan_out), jnp.float32, -bound, bound)
        return w, b

    w1, b1 = lin(ks[0], ks[1], input_dim, hidden_dim)
    w2, b2 = lin(ks[2], ks[3], hidden_dim, hidden_dim)
    wm, bm = lin(ks[4], ks[5], hidden_dim, N_MACRO)
    w_move, b_move = lin(ks[6], ks[7], hidden_dim, PARAM_DIMS['move'])
    w_shoot, b_shoot = lin(ks[8], ks[9], hidden_dim, PARAM_DIMS['shoot'])
    w_int, b_int = lin(ks[10], ks[11], hidden_dim, PARAM_DIMS['intercept'])

    return {'w1': w1, 'b1': b1, 'w2': w2, 'b2': b2, 'wm': wm, 'bm': bm,
            'w_move': w_move, 'b_move': b_move,
            'w_shoot': w_shoot, 'b_shoot': b_shoot,
            'w_int': w_int, 'b_int': b_int}


def pack_params(p, input_dim, hidden_dim):
    """Pack ALL parameters (weights + biases) into one
    (input_dim + 2*hidden + 8, hidden) slab -> a single parameter DMA per call.
    Head order: macro(3) | move(2) | shoot(1) | intercept(2), zero-padded to
    `hidden` lanes so the fused head matmul/store is lane-dense.  Bias block
    rows: [b1 ; b2 ; b_heads ; 5 zero rows] (padded to 8 = one sublane tile)."""
    assert input_dim % 8 == 0, "input_dim must be sublane-aligned for slab carving"
    assert hidden_dim % 128 == 0 and hidden_dim >= N_HEAD

    wh = jnp.concatenate([p['wm'], p['w_move'], p['w_shoot'], p['w_int']], axis=1)
    bh = jnp.concatenate([p['bm'], p['b_move'], p['b_shoot'], p['b_int']], axis=1)
    wh = jnp.pad(wh, ((0, 0), (0, hidden_dim - N_HEAD)))
    bh = jnp.pad(bh, ((0, 0), (0, hidden_dim - N_HEAD)))

    b_block = jnp.concatenate([p['b1'], p['b2'], bh], axis=0)            # (3, hid)
    b_block = jnp.pad(b_block, ((0, BIAS_ROWS - 3), (0, 0)))             # (8, hid)

    slab = jnp.concatenate([p['w1'], p['w2'], wh, b_block], axis=0)
    return slab   # (input_dim + 2*hidden + 8, hidden)


def _reference(state, p):
    """Pure-JAX reference of the PyTorch forward."""
    h = jnp.maximum(state @ p['w1'] + p['b1'], 0.0)
    h = jnp.maximum(h @ p['w2'] + p['b2'], 0.0)
    macro = h @ p['wm'] + p['bm']
    params = {'move': h @ p['w_move'] + p['b_move'],
              'shoot': h @ p['w_shoot'] + p['b_shoot'],
              'intercept': h @ p['w_int'] + p['b_int']}
    return h, macro, params


if __name__ == "__main__":
    key = jax.random.PRNGKey(0)
    k_param, k_state, k_roll = jax.random.split(key, 3)

    batch = 8
    input_dim = 32
    hidden_dim = 128
    steps = 4

    p = init_params(k_param, input_dim, hidden_dim)
    slab = pack_params(p, input_dim, hidden_dim)
    state = jax.random.normal(k_state, (batch, input_dim), jnp.float32)

    # --- single-call path (features + heads, fused single output DMA) ---
    feats, macro_logits, param_outputs = macro_policy_forward(state, slab)
    jax.block_until_ready((feats, macro_logits, param_outputs))

    ref_h, ref_macro, ref_params = _reference(state, p)
    assert feats.shape == (batch, hidden_dim)
    assert jnp.allclose(feats, ref_h, atol=1e-5, rtol=1e-5)
    assert macro_logits.shape == (batch, N_MACRO)
    assert jnp.allclose(macro_logits, ref_macro, atol=1e-5, rtol=1e-5)
    for name in MACRO_ACTIONS:
        assert param_outputs[name].shape == (batch, PARAM_DIMS[name])
        assert jnp.allclose(param_outputs[name], ref_params[name], atol=1e-5, rtol=1e-5)

    # --- features-skipped fast path (drops the feature half of the writeback) ---
    nofeat, macro2, params2 = macro_policy_forward(state, slab, return_features=False)
    jax.block_until_ready((macro2, params2))
    assert nofeat is None
    assert jnp.allclose(macro2, ref_macro, atol=1e-5, rtol=1e-5)
    for name in MACRO_ACTIONS:
        assert jnp.allclose(params2[name], ref_params[name], atol=1e-5, rtol=1e-5)

    # --- multi-step rollout path: weight-stationary grid, one launch for T steps ---
    states = jax.random.normal(k_roll, (steps, batch, input_dim), jnp.float32)
    rfeats, rmacro, rparams = macro_policy_forward_steps(states, slab)
    jax.block_until_ready((rfeats, rmacro, rparams))

    flat = states.reshape(steps * batch, input_dim)
    ref_hf, ref_mf, ref_pf = _reference(flat, p)
    assert rfeats.shape == (steps, batch, hidden_dim)
    assert jnp.allclose(rfeats.reshape(-1, hidden_dim), ref_hf, atol=1e-5, rtol=1e-5)
    assert jnp.allclose(rmacro.reshape(-1, N_MACRO), ref_mf, atol=1e-5, rtol=1e-5)
    for name in MACRO_ACTIONS:
        assert jnp.allclose(rparams[name].reshape(-1, PARAM_DIMS[name]),
                            ref_pf[name], atol=1e-5, rtol=1e-5)

    print("KERNEL_OK")
</pallas_src>

<mosaic_0001>
module attributes {stable_mosaic.version = 11 : i64} {
  func.func @_macro_policy_kernel(%arg0: memref<8x32xf32, #tpu.memory_space<vmem>>, %arg1: memref<296x128xf32, #tpu.memory_space<vmem>>, %arg2: memref<8x256xf32, #tpu.memory_space<vmem>>) attributes {dimension_semantics = [], scalar_prefetch = 0 : i64, scratch_operands = 0 : i64, tpu.core_type = #tpu.core_type<tc>} {
    %c0 = arith.constant 0 : index
    %c0_0 = arith.constant 0 : index
    %0 = vector.load %arg0[%c0, %c0_0] : memref<8x32xf32, #tpu.memory_space<vmem>>, vector<8x32xf32>
    %c288 = arith.constant 288 : index
    %c0_1 = arith.constant 0 : index
    %1 = vector.load %arg1[%c288, %c0_1] : memref<296x128xf32, #tpu.memory_space<vmem>>, vector<8x128xf32>
    %c0_2 = arith.constant 0 : index
    %c0_3 = arith.constant 0 : index
    %2 = vector.load %arg1[%c0_2, %c0_3] : memref<296x128xf32, #tpu.memory_space<vmem>>, vector<32x128xf32>
    %cst = arith.constant dense<0.000000e+00> : vector<8x128xf32>
    %3 = tpu.matmul %0, %2, %cst {dimension_numbers = #tpu.dot_dimension_numbers<[1], [0], [0], [1], [0, 0, 1, 1], [], []>} : vector<8x32xf32>, vector<32x128xf32>, vector<8x128xf32> -> vector<8x128xf32>
    %4 = vector.extract_strided_slice %1 {offsets = [0, 0], sizes = [1, 128], strides = [1, 1]} : vector<8x128xf32> to vector<1x128xf32>
    %5 = vector.broadcast %4 : vector<1x128xf32> to vector<8x128xf32>
    %6 = arith.addf %3, %5 : vector<8x128xf32>
    %cst_4 = arith.constant 0.000000e+00 : f32
    %7 = vector.broadcast %cst_4 : f32 to vector<8x128xf32>
    %8 = arith.maximumf %6, %7 : vector<8x128xf32>
    %c32 = arith.constant 32 : index
    %c0_5 = arith.constant 0 : index
    %9 = vector.load %arg1[%c32, %c0_5] : memref<296x128xf32, #tpu.memory_space<vmem>>, vector<128x128xf32>
    %cst_6 = arith.constant dense<0.000000e+00> : vector<8x128xf32>
    %10 = tpu.matmul %8, %9, %cst_6 {dimension_numbers = #tpu.dot_dimension_numbers<[1], [0], [0], [1], [0, 0, 1, 1], [], []>} : vector<8x128xf32>, vector<128x128xf32>, vector<8x128xf32> -> vector<8x128xf32>
    %11 = vector.extract_strided_slice %1 {offsets = [1, 0], sizes = [1, 128], strides = [1, 1]} : vector<8x128xf32> to vector<1x128xf32>
    %12 = vector.broadcast %11 : vector<1x128xf32> to vector<8x128xf32>
    %13 = arith.addf %10, %12 : vector<8x128xf32>
    %cst_7 = arith.constant 0.000000e+00 : f32
    %14 = vector.broadcast %cst_7 : f32 to vector<8x128xf32>
    %15 = arith.maximumf %13, %14 : vector<8x128xf32>
    %c160 = arith.constant 160 : index
    %c0_8 = arith.constant 0 : index
    %16 = vector.load %arg1[%c160, %c0_8] : memref<296x128xf32, #tpu.memory_space<vmem>>, vector<128x128xf32>
    %cst_9 = arith.constant dense<0.000000e+00> : vector<8x128xf32>
    %17 = tpu.matmul %15, %16, %cst_9 {dimension_numbers = #tpu.dot_dimension_numbers<[1], [0], [0], [1], [0, 0, 1, 1], [], []>} : vector<8x128xf32>, vector<128x128xf32>, vector<8x128xf32> -> vector<8x128xf32>
    %18 = vector.extract_strided_slice %1 {offsets = [2, 0], sizes = [1, 128], strides = [1, 1]} : vector<8x128xf32> to vector<1x128xf32>
    %19 = vector.broadcast %18 : vector<1x128xf32> to vector<8x128xf32>
    %20 = arith.addf %17, %19 : vector<8x128xf32>
    %c0_10 = arith.constant 0 : index
    %c0_11 = arith.constant 0 : index
    %21 = vector.load %arg2[%c0_10, %c0_11] : memref<8x256xf32, #tpu.memory_space<vmem>>, vector<8x128xf32>
    tpu.vector_store %arg2[%c0_10, %c0_11], %15 {strides = array<i32>} : memref<8x256xf32, #tpu.memory_space<vmem>>, vector<8x128xf32>,
    %c0_12 = arith.constant 0 : index
    %c128 = arith.constant 128 : index
    %22 = vector.load %arg2[%c0_12, %c128] : memref<8x256xf32, #tpu.memory_space<vmem>>, vector<8x128xf32>
    tpu.vector_store %arg2[%c0_12, %c128], %20 {strides = array<i32>} : memref<8x256xf32, #tpu.memory_space<vmem>>, vector<8x128xf32>,
    return
  }
}

</mosaic_0001>

<bundles_post_ra>
// kernel: tpu_custom_call.1
= control target key start
LH: loop header
LB: loop body
LE: loop exit
PB: predicated region body
PF: predicated region fallthrough
CT: control target
= control target key end

     0   :  { %7 = vsyncpa [#allocation3], 0  ;;  %s664_s0 = inlined_call_operand.hbm [shape: f32[8,32], index: 0, kind: input, shape index: {}]   ;;  %s665_s1 = inlined_call_operand.hbm [shape: f32[296,128], index: 1, kind: input, shape index: {}]   ;;  %s666_s2 = inlined_call_operand.hbm [shape: f32[8,256], index: 2, kind: output, shape index: {}]  }
   0x1   :  { %8 = vsyncpa [#allocation6], 0 }
   0x2   :  { %9 = vsyncpa [#allocation4], 0  ;;  %s577_s9 = smov [#allocation2]   ;;  %s578_s11 = smov [#allocation5]  }
   0x3   :  { %s16_s10 = sshll.u32 %s577_s9, 4  ;;  %s25_s12 = sshll.u32 %s578_s11, 4  ;;  %s17_s10 = int_to_ptr.vmem [resolvable:$true] %s16_s10  ;;  %s600_s12 = int_to_ptr.vmem [resolvable:$true] %s25_s12 }
   0x4   :  { %s505_s15 = scalar_lea.hbm %s664_s0, 128 }
   0x5   :  { %p506_p0 = scmp.ne.s32.totalorder %s664_s0, %s505_s15  ;;  %p509_p1 = scmp.lt.u32.totalorder %s505_s15, %s664_s0 }
   0x7   :  { %p511_p2 = pnand %p509_p1, %p506_p0 }
   0x9   :  { %514 = shalt.err (!%p511_p2)
}
   0xa   :  { %s515_s20 = scalar_lea.vmem %s17_s10, 128  ;;  %p520_p4 = scmp.lt.s32.totalorder %s17_s10, %s17_s10 }
   0xb   :  { %p516_p3 = scmp.ne.s32.totalorder %s17_s10, %s515_s20  ;;  %p521_p5 = scmp.lt.s32.totalorder %s515_s20, %s515_s20 }
   0xd   :  { %p522_p6 = por %p521_p5, %p520_p4 }
   0xf   :  { %p523_p7 = pnand %p522_p6, %p516_p3 }
  0x11   :  { %526 = shalt.err (!%p523_p7)
}
  0x12   :  { %19 = dma.hbm_to_vmem [thread:$0]  %s664_s0, 128, %s17_s10, [#allocation3]  }
  0x13   :  { %s527_s25 = scalar_lea.hbm %s665_s1, 4736 }
  0x14   :  { %p528_p8 = scmp.ne.s32.totalorder %s665_s1, %s527_s25  ;;  %p531_p9 = scmp.lt.u32.totalorder %s527_s25, %s665_s1 }
  0x16   :  { %p533_p10 = pnand %p531_p9, %p528_p8 }
  0x18   :  { %536 = shalt.err (!%p533_p10)
}
  0x19   :  { %s537_s30 = scalar_lea.vmem %s600_s12, 4736  ;;  %p542_p12 = scmp.lt.s32.totalorder %s600_s12, %s600_s12 }
  0x1a   :  { %p538_p11 = scmp.ne.s32.totalorder %s600_s12, %s537_s30  ;;  %p543_p13 = scmp.lt.s32.totalorder %s537_s30, %s537_s30 }
  0x1c   :  { %p544_p0 = por %p543_p13, %p542_p12 }
  0x1e   :  { %p545_p1 = pnand %p544_p0, %p538_p11 }
  0x20   :  { %548 = shalt.err (!%p545_p1)
}
  0x21   :  { %s579_s0 = smov 128   ;;  %s580_s3 = smov 8  }
  0x22   :  { %31 = dma.hbm_to_vmem [thread:$0]  %s665_s1, 4736, %s600_s12, [#allocation6], %s579_s0, %s579_s0, %s580_s3  }
  0x23   :  { %571 = dma.done.wait [#allocation3], 128  }
  0x24   :  { %572 = vsyncadd [#allocation3], 4294967168 }
  0x25   :  { %573 = dma.done.wait [#allocation6], 4736  }
  0x26   :  { %574 = vsyncadd [#allocation6], 4294962560  ;;  %v581_v0 = vmov 0.0|0.0   ;;  %vm582_vm0 = vmmov 0   ;;  %v583_v1 = vmov 0.0   ;;  %v40_v2 = vld [vmem:[#allocation5] sm:$0xff]  ;;  %v44_v54 = vlaneseq }
  0x27   :  { %443 = vmatprep.subr.bf16.mxu0 %v581_v0  ;;  %370 = vmatprep.mubr.msk.f32.mxu0 %vm582_vm0, %v583_v1  ;;  %v41_v3 = vld [vmem:[#allocation5 + $0x8] sm:$0xff]  ;;  %v42_v4 = vld [vmem:[#allocation5 + $0x10] sm:$0xff]  ;;  %v43_v6 = vld [vmem:[#allocation5 + $0x18] sm:$0xff]  ;;  %vm48_vm1 = vcmask 261120   ;;  %s584_s1 = smov [#allocation7]  }
  0x28   :  { %449 = vmatprep.subr.bf16.mxu1 %v581_v0  ;;  %405 = vmatprep.mubr.msk.f32.mxu1 %vm582_vm0, %v583_v1  ;;  %v444_v5 = vpack.c.bf16 %v41_v3, %v40_v2  ;;  %v123_v7 = vld [vmem:[#allocation5 + $0x20] sm:$0xff]  ;;  %v124_v8 = vld [vmem:[#allocation5 + $0x28] sm:$0xff]  ;;  %v125_v9 = vld [vmem:[#allocation5 + $0x30] sm:$0xff]  ;;  %v447_v11 = vpack.c.bf16 %v43_v6, %v42_v4  ;;  %v45_v55 = vshrl.u32 %v44_v54, 7  ;;  %s312_s6 = sshll.u32 %s584_s1, 4  ;;  %s313_s6 = int_to_ptr.vmem [resolvable:$true] %s312_s6 }
  0x29   :  { %v126_v10 = vld [vmem:[#allocation5 + $0x38] sm:$0xff]  ;;  %v450_v12 = vpack.c.bf16 %v124_v8, %v123_v7  ;;  %v127_v14 = vld [vmem:[#allocation5 + $0x40] sm:$0xff]  ;;  %v128_v15 = vld [vmem:[#allocation5 + $0x48] sm:$0xff]  ;;  %s549_s7 = scalar_lea.vmem %s313_s6, 256  ;;  %p554_p3 = scmp.lt.s32.totalorder %s313_s6, %s313_s6 }
  0x2a   :  { %445 = vmatpush3.bf16.msra.mxu0 %v444_v5  ;;  %v453_v13 = vpack.c.bf16 %v126_v10, %v125_v9  ;;  %v38_v16 = vld [vmem:[#allocation2] sm:$0xff]  ;;  %v456_v17 = vpack.c.bf16 %v128_v15, %v127_v14  ;;  %v129_v18 = vld [vmem:[#allocation5 + $0x50] sm:$0xff]  ;;  %v131_v21 = vld [vmem:[#allocation5 + $0x60] sm:$0xff]  ;;  %v46_v56 = vsub.s32 0, %v45_v55  ;;  %v141_v3 = vsub.s32 1, %v45_v55  ;;  %p550_p2 = scmp.ne.s32.totalorder %s313_s6, %s549_s7  ;;  %p555_p4 = scmp.lt.s32.totalorder %s549_s7, %s549_s7 }
  0x2b   :  { %446 = vmatprep.subr.bf16.mxu0 %v581_v0  ;;  %451 = vmatpush3.bf16.msra.mxu1 %v450_v12  ;;  %v130_v19 = vld [vmem:[#allocation5 + $0x58] sm:$0xff]  ;;  %v132_v22 = vld [vmem:[#allocation5 + $0x68] sm:$0xff]  ;;  %v133_v24 = vld [vmem:[#allocation5 + $0x70] sm:$0xff]  ;;  %v232_v8 = vsub.s32 2, %v45_v55 }
  0x2c   :  { %452 = vmatprep.subr.bf16.mxu1 %v581_v0  ;;  %v459_v20 = vpack.c.bf16 %v130_v19, %v129_v18  ;;  %v462_v23 = vpack.c.bf16 %v132_v22, %v131_v21  ;;  %v134_v25 = vld [vmem:[#allocation5 + $0x78] sm:$0xff]  ;;  %v135_v27 = vld [vmem:[#allocation5 + $0x80] sm:$0xff]  ;;  %v136_v28 = vld [vmem:[#allocation5 + $0x88] sm:$0xff]  ;;  %p556_p5 = por %p555_p4, %p554_p3 }
  0x2d   :  { %v465_v26 = vpack.c.bf16 %v134_v25, %v133_v24  ;;  %v468_v29 = vpack.c.bf16 %v136_v28, %v135_v27  ;;  %v137_v30 = vld [vmem:[#allocation5 + $0x90] sm:$0xff]  ;;  %v138_v31 = vld [vmem:[#allocation5 + $0x98] sm:$0xff]  ;;  %v214_v33 = vld [vmem:[#allocation5 + $0xa0] sm:$0xff] }
  0x2e   :  { %448 = vmatpush3.bf16.msra.mxu0 %v447_v11  ;;  %v471_v32 = vpack.c.bf16 %v138_v31, %v137_v30  ;;  %v215_v34 = vld [vmem:[#allocation5 + $0xa8] sm:$0xff]  ;;  %v216_v35 = vld [vmem:[#allocation5 + $0xb0] sm:$0xff]  ;;  %v217_v37 = vld [vmem:[#allocation5 + $0xb8] sm:$0xff]  ;;  %p557_p6 = pnand %p556_p5, %p550_p2 }
  0x2f   :  { %473 = vmatprep.subr.bf16.mxu0 %v581_v0  ;;  %454 = vmatpush3.bf16.msra.mxu1 %v453_v13  ;;  %v474_v36 = vpack.c.bf16 %v215_v34, %v214_v33  ;;  %v477_v38 = vpack.c.bf16 %v217_v37, %v216_v35  ;;  %v218_v39 = vld [vmem:[#allocation5 + $0xc0] sm:$0xff]  ;;  %v219_v40 = vld [vmem:[#allocation5 + $0xc8] sm:$0xff]  ;;  %v220_v42 = vld [vmem:[#allocation5 + $0xd0] sm:$0xff] }
  0x30   :  { %455 = vmatprep.subr.bf16.mxu1 %v581_v0  ;;  %v480_v41 = vpack.c.bf16 %v219_v40, %v218_v39  ;;  %v221_v43 = vld [vmem:[#allocation5 + $0xd8] sm:$0xff]  ;;  %v222_v45 = vld [vmem:[#allocation5 + $0xe0] sm:$0xff]  ;;  %v223_v46 = vld [vmem:[#allocation5 + $0xe8] sm:$0xff] }
  0x31   :  { %371 = vmatmul.mubr.msk.f32.vlgmr.msra.gmra.mrb[0].mxu0 %vm48_vm1, %v38_v16  ;;  %v483_v44 = vpack.c.bf16 %v221_v43, %v220_v42  ;;  %v486_v47 = vpack.c.bf16 %v223_v46, %v222_v45  ;;  %v224_v48 = vld [vmem:[#allocation5 + $0xf0] sm:$0xff]  ;;  %v225_v49 = vld [vmem:[#allocation5 + $0xf8] sm:$0xff]  ;;  %v226_v51 = vld [vmem:[#allocation5 + $0x100] sm:$0xff] }
  0x32   :  { %440 = vmatprep.mubr.msk.f32.mxu0 %vm582_vm0, %v583_v1  ;;  %475 = vmatpush3.bf16.msra.mxu0 %v474_v36  ;;  %v489_v50 = vpack.c.bf16 %v225_v49, %v224_v48  ;;  %v227_v52 = vld [vmem:[#allocation5 + $0x108] sm:$0xff]  ;;  %v39_v57 = vld [vmem:[#allocation5 + $0x120] sm:$0xff]  ;;  %v228_v63 = vld [vmem:[#allocation5 + $0x110] sm:$0xff] }
  0x33   :  { %457 = vmatpush3.bf16.msra.mxu1 %v456_v17  ;;  %476 = vmatprep.subr.bf16.mxu0 %v581_v0  ;;  %v492_v53 = vpack.c.bf16 %v227_v52, %v226_v51  ;;  %v47_v58 = vrot.slane %v39_v57, %v46_v56  ;;  %v229_v1 = vld [vmem:[#allocation5 + $0x118] sm:$0xff]  ;;  %v142_v4 = vrot.slane %v39_v57, %v141_v3 }
  0x34   :  { %458 = vmatprep.subr.bf16.mxu1 %v581_v0  ;;  %v495_v2 = vpack.c.bf16 %v229_v1, %v228_v63  ;;  %v233_v9 = vrot.slane %v39_v57, %v232_v8 }
  0x36   :  { %478 = vmatpush3.bf16.msra.mxu0 %v477_v38 }
  0x37   :  { %460 = vmatpush3.bf16.msra.mxu1 %v459_v20  ;;  %479 = vmatprep.subr.bf16.mxu0 %v581_v0 }
  0x38   :  { %461 = vmatprep.subr.bf16.mxu1 %v581_v0 }
  0x3a   :  { %481 = vmatpush3.bf16.msra.mxu0 %v480_v41 }
  0x3b   :  { %463 = vmatpush3.bf16.msra.mxu1 %v462_v23  ;;  %482 = vmatprep.subr.bf16.mxu0 %v581_v0 }
  0x3c   :  { %464 = vmatprep.subr.bf16.mxu1 %v581_v0 }
  0x3e   :  { %484 = vmatpush3.bf16.msra.mxu0 %v483_v44 }
  0x3f   :  { %466 = vmatpush3.bf16.msra.mxu1 %v465_v26  ;;  %485 = vmatprep.subr.bf16.mxu0 %v581_v0 }
  0x40   :  { %467 = vmatprep.subr.bf16.mxu1 %v581_v0 }
  0x42   :  { %487 = vmatpush3.bf16.msra.mxu0 %v486_v47 }
  0x43   :  { %469 = vmatpush3.bf16.msra.mxu1 %v468_v29  ;;  %488 = vmatprep.subr.bf16.mxu0 %v581_v0 }
  0x44   :  { %470 = vmatprep.subr.bf16.mxu1 %v581_v0 }
  0x46   :  { %490 = vmatpush3.bf16.msra.mxu0 %v489_v50 }
  0x47   :  { %472 = vmatpush3.bf16.msra.mxu1 %v471_v32  ;;  %491 = vmatprep.subr.bf16.mxu0 %v581_v0 }
  0x4a   :  { %493 = vmatpush3.bf16.msra.mxu0 %v492_v53 }
  0x4b   :  { %494 = vmatprep.subr.bf16.mxu0 %v581_v0 }
  0x4e   :  { %496 = vmatpush3.bf16.msra.mxu0 %v495_v2 }
 0x104   :  { %v118_v59 = vpop.f32.mrb[0].mxu0 }
 0x105   :  { %v119_v60 = vadd.f32 %v118_v59, %v47_v58  ;;  %v372_v61 = vpop.f32.mrb[1].mxu0 }
 0x107   :  { %v122_v62 = vmax.f32 %v119_v60, 0.0 }
 0x109   :  { %406 = vmatmul.mubr.f32.vlgmr.msra.gmra.mrb[0].mxu1 %v122_v62 }
 0x1dc   :  { %v209_v5 = vpop.f32.mrb[0].mxu1 }
 0x1dd   :  { %v210_v6 = vadd.f32 %v209_v5, %v142_v4  ;;  %v407_v7 = vpop.f32.mrb[1].mxu1 }
 0x1df   :  { %v213_v0 = vmax.f32 %v210_v6, 0.0 }
 0x1e1   :  { %304 = vst [vmem:[#allocation7] sm:$0xff] %v213_v0  ;;  %441 = vmatmul.mubr.f32.vlgmr.msra.gmra.mrb[2].mxu0 %v213_v0 }
 0x2b4   :  { %v300_v10 = vpop.f32.mrb[2].mxu0 }
 0x2b5   :  { %v301_v11 = vadd.f32 %v300_v10, %v233_v9  ;;  %v442_v12 = vpop.f32.mrb[3].mxu0 }
 0x2b7   :  { %305 = vst [vmem:[#allocation7 + $0x8] sm:$0xff] %v301_v11 }
 0x2b8   :  { %560 = shalt.err (!%p557_p6)
}
 0x2b9   :  { %s561_s10 = scalar_lea.hbm %s666_s2, 256 }
 0x2ba   :  { %p562_p7 = scmp.ne.s32.totalorder %s666_s2, %s561_s10  ;;  %p565_p8 = scmp.lt.u32.totalorder %s561_s10, %s666_s2 }
 0x2bc   :  { %p567_p9 = pnand %p565_p8, %p562_p7 }
 0x2be   :  { %570 = shalt.err (!%p567_p9)
}
 0x2bf   :  { %315 = dma.vmem_to_hbm [thread:$0]  %s313_s6, 256, %s666_s2, [#allocation4]  }
 0x2c0   :  { %575 = dma.done.wait [#allocation4], 256  }
 0x2c1   :  { %576 = vsyncadd [#allocation4], 4294967040 }
 0x2c2   :  { %319 = vsyncpa [#allocation3], 1 }
 0x2c3   :  { %320 = vsyncpa [#allocation6], 1 }
 0x2c4   :  { %321 = vsyncpa [#allocation4], 1 }

</bundles_post_ra>
